<compile_context>
chip_gen: v5e
topology: v5e:2x2
jax: 0.10.0
libtpu: 0.0.40
codegen_flags: <defaults>
</compile_context>

<pallas_src>
import functools

import jax
import jax.numpy as jnp
from jax.experimental import pallas as pl
from jax.experimental.pallas import tpu as pltpu

LANE = 128      # vreg lane width
SUBLANE = 8     # vreg sublane count (f32)


def _round_up(x, m):
    return ((x + m - 1) // m) * m


def _device_vmem_bytes():
    """Per-core VMEM capacity; conservative 64 MiB fallback (v7x) if query fails."""
    try:
        return int(pltpu.get_tpu_info().vmem_capacity_bytes)
    except Exception:
        return 64 * 1024 * 1024


# --------------------------------------------------------------------------- #
# Parameter preparation (done once, outside the forward path)
# --------------------------------------------------------------------------- #
def prepare_mlp_params(weights, biases):
    """Zero-pad layer widths to multiples of 128 lanes and cast weights to bf16.

    weights[i]: (dims[i], dims[i+1]) f32; biases[i]: (dims[i+1],) f32.
    The input width dims[0] is kept UNPADDED (x uses a full-extent block).
    Zero padding is exact: padded rows/cols and bias entries are 0; tanh(0)=0
    propagates; padded output columns are sliced off.
    """
    assert len(weights) == len(biases) and len(weights) >= 1
    dims = [int(weights[0].shape[0])] + [int(w.shape[1]) for w in weights]
    pdims = [dims[0]] + [_round_up(d, LANE) for d in dims[1:]]

    pw, pb = [], []
    for i, (w, b) in enumerate(zip(weights, biases)):
        ki, ko = pdims[i], pdims[i + 1]
        w_p = jnp.zeros((ki, ko), jnp.bfloat16).at[:w.shape[0], :w.shape[1]].set(
            w.astype(jnp.bfloat16))
        b_p = jnp.zeros((1, ko), jnp.float32).at[0, :w.shape[1]].set(
            jnp.reshape(b, (-1,)).astype(jnp.float32))
        pw.append(w_p)
        pb.append(b_p)
    return {"dims": tuple(dims), "pdims": tuple(pdims), "weights": pw, "biases": pb}


# --------------------------------------------------------------------------- #
# Fused (weight-resident) kernel
# --------------------------------------------------------------------------- #
def _mlp_fused_kernel(n_hidden, n_chunks, *refs):
    """All layers fused on one batch tile; weights stay VMEM-resident.

    refs = (x_ref, w0_ref, b0_ref, ..., wL_ref, bL_ref, out_ref).
    The batch tile is split into n_chunks M-sub-chunks so chunk j's tanh (EUP)
    can be scheduled under chunk j+-1's matmul (MXU).
    """
    x_ref = refs[0]
    out_ref = refs[-1]
    wb = refs[1:-1]

    tb = x_ref.shape[0]
    cm = tb // n_chunks
    hs = [x_ref[c * cm:(c + 1) * cm, :] for c in range(n_chunks)]   # bf16 chunks

    for i in range(n_hidden):
        w = wb[2 * i][...]                              # bf16 (K_pad, N_pad), resident
        b = wb[2 * i + 1][...]                          # f32  (1, N_pad)
        accs = [jnp.dot(h, w, preferred_element_type=jnp.float32) + b for h in hs]
        hs = [jnp.tanh(a).astype(jnp.bfloat16) for a in accs]
        # nn.Dropout(p=0) / eval mode is the identity -> nothing to do.

    w = wb[2 * n_hidden][...]
    b = wb[2 * n_hidden + 1][...]
    for c in range(n_chunks):
        o = jnp.dot(hs[c], w, preferred_element_type=jnp.float32) + b
        out_ref[c * cm:(c + 1) * cm, :] = o.astype(out_ref.dtype)


def _forward_resident(x, params, block_batch, out_dtype, vmem_cap):
    dims, pdims = params["dims"], params["pdims"]
    pw, pb = params["weights"], params["biases"]
    n_layers = len(pw)
    n_hidden = n_layers - 1
    B = x.shape[0]
    out_itemsize = jnp.dtype(out_dtype).itemsize

    tb = block_batch if B >= block_batch else _round_up(max(B, 1), SUBLANE)
    b_pad = _round_up(B, tb)
    grid = (b_pad // tb,)
    n_chunks = 2 if (tb >= 64 and tb % 32 == 0) else 1   # chunks stay bf16-sublane aligned

    # Input: zero-pad batch only; keep d_in unpadded (full-extent last-dim block).
    x_p = jnp.zeros((b_pad, pdims[0]), jnp.bfloat16).at[:B, :dims[0]].set(
        x.astype(jnp.bfloat16))

    args = [x_p]
    in_specs = [pl.BlockSpec((tb, pdims[0]), lambda i: (i, 0))]
    for li in range(n_layers):
        ki, ko = pdims[li], pdims[li + 1]
        args.extend([pw[li], pb[li]])
        # Constant index maps + single buffer: DMA'd once, VMEM-resident, no 2x waste.
        in_specs.append(pl.BlockSpec((ki, ko), lambda i: (0, 0),
                                     pipeline_mode=pl.Buffered(1)))
        in_specs.append(pl.BlockSpec((1, ko), lambda i: (0, 0),
                                     pipeline_mode=pl.Buffered(1)))
    out_spec = pl.BlockSpec((tb, pdims[-1]), lambda i: (i, 0))

    flops = int(2 * sum(b_pad * pdims[i] * pdims[i + 1] for i in range(n_layers)))
    transcendentals = int(b_pad * sum(pdims[1:-1]))
    weight_bytes = int(sum(int(w.size) * 2 for w in pw))
    bias_bytes = int(sum(int(b.size) * 4 for b in pb))
    io_bytes = int(b_pad * pdims[0] * 2 + b_pad * pdims[-1] * out_itemsize)
    cost = pl.CostEstimate(flops=flops, transcendentals=transcendentals,
                           bytes_accessed=weight_bytes + bias_bytes + io_bytes)

    # VMEM budget: single-buffered weights + double-buffered x/out tiles
    # + per-layer activation/accumulator temporaries.
    act_scratch = tb * max(pdims) * 8                   # bf16 h + f32 acc (rough)
    needed = (weight_bytes + bias_bytes
              + 2 * tb * pdims[0] * 2
              + 2 * tb * pdims[-1] * out_itemsize
              + act_scratch + (2 << 20))
    vmem_limit = int(min(max(needed, 32 * 1024 * 1024), int(0.9 * vmem_cap)))

    out_p = pl.pallas_call(
        functools.partial(_mlp_fused_kernel, n_hidden, n_chunks),
        out_shape=jax.ShapeDtypeStruct((b_pad, pdims[-1]), out_dtype),
        grid_spec=pltpu.PrefetchScalarGridSpec(
            num_scalar_prefetch=0, grid=grid, in_specs=in_specs, out_specs=out_spec),
        compiler_params=pltpu.CompilerParams(
            dimension_semantics=("parallel",),      # batch tiles independent
            vmem_limit_bytes=vmem_limit),
        cost_estimate=cost,
    )(*args)
    return out_p[:B, :dims[-1]]


# --------------------------------------------------------------------------- #
# Streaming fallback: per-layer kernel, weight streamed over N tiles
# --------------------------------------------------------------------------- #
def _layer_kernel(apply_tanh, x_ref, w_ref, b_ref, o_ref):
    acc = jnp.dot(x_ref[...], w_ref[...], preferred_element_type=jnp.float32) + b_ref[...]
    if apply_tanh:
        acc = jnp.tanh(acc)
    o_ref[...] = acc.astype(o_ref.dtype)


def _forward_streaming(x, params, block_batch, out_dtype, vmem_cap):
    dims, pdims = params["dims"], params["pdims"]
    pw, pb = params["weights"], params["biases"]
    n_layers = len(pw)
    B = x.shape[0]

    tm = block_batch if B >= block_batch else _round_up(max(B, 1), SUBLANE)
    b_pad = _round_up(B, tm)

    h = jnp.zeros((b_pad, pdims[0]), jnp.bfloat16).at[:B, :dims[0]].set(
        x.astype(jnp.bfloat16))

    for li in range(n_layers):
        is_last = (li == n_layers - 1)
        K, N = pdims[li], pdims[li + 1]
        tn = 512 if N % 512 == 0 else (256 if N % 256 == 0 else 128)
        tn = min(tn, N)
        layer_dtype = out_dtype if is_last else jnp.bfloat16
        it = jnp.dtype(layer_dtype).itemsize
        grid = (b_pad // tm, N // tn)

        flops = int(2 * b_pad * K * N)
        trans = 0 if is_last else int(b_pad * N)
        bytes_acc = int(b_pad * K * 2 + K * N * 2 + N * 4 + b_pad * N * it)
        needed = int(2 * (tm * K * 2 + K * tn * 2 + tn * 4 + tm * tn * it)
                     + tm * tn * 4 + (2 << 20))
        vmem_limit = int(min(max(needed, 32 * 1024 * 1024), int(0.9 * vmem_cap)))

        h = pl.pallas_call(
            functools.partial(_layer_kernel, not is_last),
            out_shape=jax.ShapeDtypeStruct((b_pad, N), layer_dtype),
            grid_spec=pltpu.PrefetchScalarGridSpec(
                num_scalar_prefetch=0, grid=grid,
                in_specs=[pl.BlockSpec((tm, K), lambda i, j: (i, 0)),
                          pl.BlockSpec((K, tn), lambda i, j: (0, j)),
                          pl.BlockSpec((1, tn), lambda i, j: (0, j))],
                out_specs=pl.BlockSpec((tm, tn), lambda i, j: (i, j))),
            compiler_params=pltpu.CompilerParams(
                dimension_semantics=("parallel", "parallel"),
                vmem_limit_bytes=vmem_limit),
            cost_estimate=pl.CostEstimate(flops=flops, transcendentals=trans,
                                          bytes_accessed=bytes_acc),
        )(h, pw[li], pb[li])
    return h[:B, :dims[-1]].astype(out_dtype)


# --------------------------------------------------------------------------- #
# Public forward
# --------------------------------------------------------------------------- #
def mlp_forward(x, params, *, block_batch=256, out_dtype=jnp.float32, mode="auto"):
    """x: (B, dims[0]); params from prepare_mlp_params(). mode: auto|resident|streaming."""
    dims, pdims = params["dims"], params["pdims"]
    assert x.ndim == 2 and x.shape[1] == dims[0]
    B = x.shape[0]
    vmem_cap = _device_vmem_bytes()
    out_itemsize = jnp.dtype(out_dtype).itemsize

    tb = block_batch if B >= block_batch else _round_up(max(B, 1), SUBLANE)
    weight_bytes = sum(int(w.size) * 2 for w in params["weights"])
    bias_bytes = sum(int(b.size) * 4 for b in params["biases"])
    resident_needed = (weight_bytes + bias_bytes
                       + 2 * tb * pdims[0] * 2
                       + 2 * tb * pdims[-1] * out_itemsize
                       + tb * max(pdims) * 8 + (2 << 20))

    if mode == "resident" or (mode == "auto" and resident_needed <= int(0.7 * vmem_cap)):
        return _forward_resident(x, params, block_batch, out_dtype, vmem_cap)
    return _forward_streaming(x, params, block_batch, out_dtype, vmem_cap)


# --------------------------------------------------------------------------- #
# Init + pure-JAX reference
# --------------------------------------------------------------------------- #
def init_mlp_params(key, dims):
    """nn.Linear-style init: U(-1/sqrt(fan_in), +1/sqrt(fan_in)); weights stored (in, out)."""
    weights, biases = [], []
    for i in range(len(dims) - 1):
        fan_in, fan_out = dims[i], dims[i + 1]
        key, kw, kb = jax.random.split(key, 3)
        bound = 1.0 / (fan_in ** 0.5)
        w = jax.random.uniform(kw, (fan_in, fan_out), jnp.float32, -bound, bound)
        b = jax.random.uniform(kb, (fan_out,), jnp.float32, -bound, bound)
        weights.append(w)
        biases.append(b)
    return weights, biases


def mlp_reference(x, weights, biases):
    """Pure-JAX reference with identical numerics (bf16 MXU operands, f32 accumulate)."""
    h = x.astype(jnp.float32)
    for w, b in zip(weights[:-1], biases[:-1]):
        acc = jnp.dot(h.astype(jnp.bfloat16), w.astype(jnp.bfloat16),
                      preferred_element_type=jnp.float32) + b.reshape(1, -1)
        h = jnp.tanh(acc)
    return (jnp.dot(h.astype(jnp.bfloat16), weights[-1].astype(jnp.bfloat16),
                    preferred_element_type=jnp.float32)
            + biases[-1].reshape(1, -1))


if __name__ == "__main__":
    key = jax.random.PRNGKey(0)

    # Small test matching the module spec: dims[0]=input, two hidden layers, dims[-1]=output.
    dims = [16, 32, 32, 8]
    batch = 4
    kx, kp, kx2, kp2 = jax.random.split(key, 4)
    x = jax.random.normal(kx, (batch, dims[0]), jnp.float32)
    weights, biases = init_mlp_params(kp, dims)
    params = prepare_mlp_params(weights, biases)

    out = jax.block_until_ready(mlp_forward(x, params))
    ref = mlp_reference(x, weights, biases)
    assert out.shape == (batch, dims[-1])
    assert jnp.allclose(out, ref, atol=1e-3, rtol=1e-3), "small-shape mismatch vs reference"

    # Larger, MXU-scale test: batch grid > 1, resident weights, 2-chunk EUP/MXU overlap.
    dims2 = [256, 512, 512, 128]
    batch2 = 512
    x2 = jax.random.normal(kx2, (batch2, dims2[0]), jnp.float32)
    weights2, biases2 = init_mlp_params(kp2, dims2)
    params2 = prepare_mlp_params(weights2, biases2)

    out2 = jax.block_until_ready(mlp_forward(x2, params2))
    ref2 = mlp_reference(x2, weights2, biases2)
    assert out2.shape == (batch2, dims2[-1])
    assert jnp.allclose(out2, ref2, atol=2e-3, rtol=2e-3), "large-shape mismatch vs reference"

    # Forced streaming path (validates the v7x large-weight fallback route).
    out3 = jax.block_until_ready(mlp_forward(x2, params2, mode="streaming"))
    assert jnp.allclose(out3, ref2, atol=2e-3, rtol=2e-3), "streaming-path mismatch vs reference"

    print("KERNEL_OK")
</pallas_src>

<mosaic_0001>
module attributes {stable_mosaic.version = 11 : i64} {
  func.func @_mlp_fused_kernel(%arg0: i32, %arg1: memref<8x16xbf16, #tpu.memory_space<vmem>>, %arg2: memref<16x128xbf16, #tpu.memory_space<vmem>>, %arg3: memref<1x128xf32, #tpu.memory_space<vmem>>, %arg4: memref<128x128xbf16, #tpu.memory_space<vmem>>, %arg5: memref<1x128xf32, #tpu.memory_space<vmem>>, %arg6: memref<128x128xbf16, #tpu.memory_space<vmem>>, %arg7: memref<1x128xf32, #tpu.memory_space<vmem>>, %arg8: memref<8x128xf32, #tpu.memory_space<vmem>>) attributes {dimension_semantics = [#tpu.dimension_semantics<parallel>], iteration_bounds = array<i64: 1>, scalar_prefetch = 0 : i64, scratch_operands = 0 : i64, tpu.core_type = #tpu.core_type<tc>, window_params = [{transform_indices = @transform_0, window_bounds = array<i64: 8, 16>}, {pipeline_mode = #tpu.pipeline_mode<synchronous>, transform_indices = @transform_1, window_bounds = array<i64: 16, 128>}, {pipeline_mode = #tpu.pipeline_mode<synchronous>, transform_indices = @transform_2, window_bounds = array<i64: 1, 128>}, {pipeline_mode = #tpu.pipeline_mode<synchronous>, transform_indices = @transform_3, window_bounds = array<i64: 128, 128>}, {pipeline_mode = #tpu.pipeline_mode<synchronous>, transform_indices = @transform_4, window_bounds = array<i64: 1, 128>}, {pipeline_mode = #tpu.pipeline_mode<synchronous>, transform_indices = @transform_5, window_bounds = array<i64: 128, 128>}, {pipeline_mode = #tpu.pipeline_mode<synchronous>, transform_indices = @transform_6, window_bounds = array<i64: 1, 128>}, {transform_indices = @transform_7, window_bounds = array<i64: 8, 128>}]} {
    %c0 = arith.constant 0 : index
    %c0_0 = arith.constant 0 : index
    %0 = vector.load %arg1[%c0, %c0_0] : memref<8x16xbf16, #tpu.memory_space<vmem>>, vector<8x16xbf16>
    %c0_1 = arith.constant 0 : index
    %c0_2 = arith.constant 0 : index
    %1 = vector.load %arg2[%c0_1, %c0_2] : memref<16x128xbf16, #tpu.memory_space<vmem>>, vector<16x128xbf16>
    %c0_3 = arith.constant 0 : index
    %c0_4 = arith.constant 0 : index
    %2 = vector.load %arg3[%c0_3, %c0_4] : memref<1x128xf32, #tpu.memory_space<vmem>>, vector<1x128xf32>
    %cst = arith.constant dense<0.000000e+00> : vector<8x128xf32>
    %3 = tpu.matmul %0, %1, %cst {dimension_numbers = #tpu.dot_dimension_numbers<[1], [0], [0], [1], [0, 0, 1, 1], [], []>} : vector<8x16xbf16>, vector<16x128xbf16>, vector<8x128xf32> -> vector<8x128xf32>
    %4 = vector.broadcast %2 : vector<1x128xf32> to vector<8x128xf32>
    %5 = arith.addf %3, %4 : vector<8x128xf32>
    %6 = math.tanh %5 : vector<8x128xf32>
    %7 = arith.truncf %6 : vector<8x128xf32> to vector<8x128xbf16>
    %c0_5 = arith.constant 0 : index
    %c0_6 = arith.constant 0 : index
    %8 = vector.load %arg4[%c0_5, %c0_6] : memref<128x128xbf16, #tpu.memory_space<vmem>>, vector<128x128xbf16>
    %c0_7 = arith.constant 0 : index
    %c0_8 = arith.constant 0 : index
    %9 = vector.load %arg5[%c0_7, %c0_8] : memref<1x128xf32, #tpu.memory_space<vmem>>, vector<1x128xf32>
    %cst_9 = arith.constant dense<0.000000e+00> : vector<8x128xf32>
    %10 = tpu.matmul %7, %8, %cst_9 {dimension_numbers = #tpu.dot_dimension_numbers<[1], [0], [0], [1], [0, 0, 1, 1], [], []>} : vector<8x128xbf16>, vector<128x128xbf16>, vector<8x128xf32> -> vector<8x128xf32>
    %11 = vector.broadcast %9 : vector<1x128xf32> to vector<8x128xf32>
    %12 = arith.addf %10, %11 : vector<8x128xf32>
    %13 = math.tanh %12 : vector<8x128xf32>
    %14 = arith.truncf %13 : vector<8x128xf32> to vector<8x128xbf16>
    %c0_10 = arith.constant 0 : index
    %c0_11 = arith.constant 0 : index
    %15 = vector.load %arg6[%c0_10, %c0_11] : memref<128x128xbf16, #tpu.memory_space<vmem>>, vector<128x128xbf16>
    %c0_12 = arith.constant 0 : index
    %c0_13 = arith.constant 0 : index
    %16 = vector.load %arg7[%c0_12, %c0_13] : memref<1x128xf32, #tpu.memory_space<vmem>>, vector<1x128xf32>
    %cst_14 = arith.constant dense<0.000000e+00> : vector<8x128xf32>
    %17 = tpu.matmul %14, %15, %cst_14 {dimension_numbers = #tpu.dot_dimension_numbers<[1], [0], [0], [1], [0, 0, 1, 1], [], []>} : vector<8x128xbf16>, vector<128x128xbf16>, vector<8x128xf32> -> vector<8x128xf32>
    %18 = vector.broadcast %16 : vector<1x128xf32> to vector<8x128xf32>
    %19 = arith.addf %17, %18 : vector<8x128xf32>
    %c0_15 = arith.constant 0 : index
    %c0_16 = arith.constant 0 : index
    %20 = vector.load %arg8[%c0_15, %c0_16] : memref<8x128xf32, #tpu.memory_space<vmem>>, vector<8x128xf32>
    tpu.vector_store %arg8[%c0_15, %c0_16], %19 {strides = array<i32>} : memref<8x128xf32, #tpu.memory_space<vmem>>, vector<8x128xf32>,
    return
  }
  func.func @transform_0(%arg0: i32) -> (i32, i32) {
    %c0_i32 = arith.constant 0 : i32
    %c0_i32_0 = arith.constant 0 : i32
    return %arg0, %c0_i32 : i32, i32
  }
  func.func @transform_1(%arg0: i32) -> (i32, i32) {
    %c0_i32 = arith.constant 0 : i32
    %c0_i32_0 = arith.constant 0 : i32
    %c0_i32_1 = arith.constant 0 : i32
    return %c0_i32, %c0_i32_0 : i32, i32
  }
  func.func @transform_2(%arg0: i32) -> (i32, i32) {
    %c0_i32 = arith.constant 0 : i32
    %c0_i32_0 = arith.constant 0 : i32
    %c0_i32_1 = arith.constant 0 : i32
    return %c0_i32, %c0_i32_0 : i32, i32
  }
  func.func @transform_3(%arg0: i32) -> (i32, i32) {
    %c0_i32 = arith.constant 0 : i32
    %c0_i32_0 = arith.constant 0 : i32
    %c0_i32_1 = arith.constant 0 : i32
    return %c0_i32, %c0_i32_0 : i32, i32
  }
  func.func @transform_4(%arg0: i32) -> (i32, i32) {
    %c0_i32 = arith.constant 0 : i32
    %c0_i32_0 = arith.constant 0 : i32
    %c0_i32_1 = arith.constant 0 : i32
    return %c0_i32, %c0_i32_0 : i32, i32
  }
  func.func @transform_5(%arg0: i32) -> (i32, i32) {
    %c0_i32 = arith.constant 0 : i32
    %c0_i32_0 = arith.constant 0 : i32
    %c0_i32_1 = arith.constant 0 : i32
    return %c0_i32, %c0_i32_0 : i32, i32
  }
  func.func @transform_6(%arg0: i32) -> (i32, i32) {
    %c0_i32 = arith.constant 0 : i32
    %c0_i32_0 = arith.constant 0 : i32
    %c0_i32_1 = arith.constant 0 : i32
    return %c0_i32, %c0_i32_0 : i32, i32
  }
  func.func @transform_7(%arg0: i32) -> (i32, i32) {
    %c0_i32 = arith.constant 0 : i32
    %c0_i32_0 = arith.constant 0 : i32
    return %arg0, %c0_i32 : i32, i32
  }
}

</mosaic_0001>

<bundles_post_ra>
// kernel: tpu_custom_call.1
= control target key start
LH: loop header
LB: loop body
LE: loop exit
PB: predicated region body
PF: predicated region fallthrough
CT: control target
= control target key end

     0   :  { %12 = vsyncpa [#allocation3], 0  ;;  %s604_s0 = inlined_call_operand.hbm [shape: bf16[8,16], index: 0, kind: input, shape index: {}]   ;;  %s605_s1 = inlined_call_operand.hbm [shape: bf16[16,128], index: 1, kind: input, shape index: {}]   ;;  %s606_s2 = inlined_call_operand.vmem [shape: f32[1,128], index: 2, kind: input, shape index: {}]   ;;  %s607_s3 = inlined_call_operand.hbm [shape: bf16[128,128], index: 3, kind: input, shape index: {}]   ;;  %s608_s4 = inlined_call_operand.vmem [shape: f32[1,128], index: 4, kind: input, shape index: {}]   ;;  %s609_s5 = inlined_call_operand.hbm [shape: bf16[128,128], index: 5, kind: input, shape index: {}]   ;;  %s610_s6 = inlined_call_operand.vmem [shape: f32[1,128], index: 6, kind: input, shape index: {}]   ;;  %s611_s7 = inlined_call_operand.hbm [shape: f32[8,128], index: 7, kind: output, shape index: {}]  }
   0x1   :  { %13 = vsyncpa [#allocation6], 0 }
   0x2   :  { %14 = vsyncpa [#allocation9], 0  ;;  %s31_s26 = sshll.u32 %s605_s1, 4  ;;  %s32_s26 = int_to_ptr.hbm [resolvable:$true] %s31_s26 }
   0x3   :  { %15 = vsyncpa [#allocation4], 0  ;;  %s533_s27 = smov [#allocation5]   ;;  %s21_s8 = sshll.u32 %s604_s0, 4  ;;  %s22_s8 = int_to_ptr.hbm [resolvable:$true] %s21_s8 }
   0x4   :  { %s33_s28 = sshll.u32 %s533_s27, 4  ;;  %s534_s9 = smov 64   ;;  %s34_s28 = int_to_ptr.vmem [resolvable:$true] %s33_s28 }
   0x5   :  { %s535_s10 = smov 4   ;;  %s536_s11 = smov [#allocation2]  }
   0x6   :  { %39 = dma.hbm_to_vmem [thread:$0]  %s32_s26, 128, %s34_s28, [#allocation6], %s534_s9, %s534_s9, %s535_s10  }
   0x7   :  { %s23_s12 = sshll.u32 %s536_s11, 4  ;;  %s46_s15 = sshll.u32 %s607_s3, 4  ;;  %s24_s12 = int_to_ptr.vmem [resolvable:$true] %s23_s12  ;;  %s47_s15 = int_to_ptr.hbm [resolvable:$true] %s46_s15 }
   0x8   :  { %26 = dma.hbm_to_vmem [thread:$0]  %s22_s8, 64, %s24_s12, [#allocation3]  }
   0x9   :  { %s61_s17 = sshll.u32 %s609_s5, 4  ;;  %s537_s18 = smov [#allocation7]   ;;  %s62_s17 = int_to_ptr.hbm [resolvable:$true] %s61_s17 }
   0xa   :  { %s48_s19 = sshll.u32 %s537_s18, 4  ;;  %s538_s0 = smov [#allocation8]   ;;  %s49_s19 = int_to_ptr.vmem [resolvable:$true] %s48_s19 }
   0xb   :  { %54 = dma.hbm_to_vmem [thread:$0]  %s47_s15, 1024, %s49_s19, [#allocation6], %s534_s9, %s534_s9, %s535_s10  }
   0xc   :  { %s63_s20 = sshll.u32 %s538_s0, 4  ;;  %s64_s20 = int_to_ptr.vmem [resolvable:$true] %s63_s20 }
   0xd   :  { %69 = dma.hbm_to_vmem [thread:$0]  %s62_s17, 1024, %s64_s20, [#allocation9], %s534_s9, %s534_s9, %s535_s10  }
   0xe   :  { %525 = dma.done.wait [#allocation3], 64  }
   0xf   :  { %526 = vsyncadd [#allocation3], 4294967232 }
  0x10   :  { %527 = dma.done.wait [#allocation6], 1152  }
  0x11   :  { %528 = vsyncadd [#allocation6], 4294966144 }
  0x12   :  { %529 = dma.done.wait [#allocation9], 1024  }
  0x13   :  { %530 = vsyncadd [#allocation9], 4294966272  ;;  %v374_v0 = vld [vmem:[#allocation5] sm:$0xff]  ;;  %v89_v2 = vld [vmem:[#allocation2] sm:$0xf]  ;;  %vm102_vm0 = vcmask 130048  }
  0x14   :  { %v382_v1 = vld [vmem:[#allocation7 + $0x38] sm:$0xff]  ;;  %113 = vmatpush.bf16.msra.mxu0 %v374_v0  ;;  %v381_v3 = vld [vmem:[#allocation7 + $0x30] sm:$0xff]  ;;  %v380_v4 = vld [vmem:[#allocation7 + $0x28] sm:$0xff]  ;;  %s539_s24 = smov [#allocation10]   ;;  %s293_s28 = sshll.u32 %s611_s7, 4  ;;  %s294_s28 = int_to_ptr.hbm [resolvable:$true] %s293_s28 }
  0x15   :  { %189 = vmatpush.bf16.msra.mxu1 %v382_v1  ;;  %v379_v5 = vld [vmem:[#allocation7 + $0x20] sm:$0xff]  ;;  %v378_v6 = vld [vmem:[#allocation7 + $0x18] sm:$0xff]  ;;  %v377_v7 = vld [vmem:[#allocation7 + $0x10] sm:$0xff]  ;;  %s291_s25 = sshll.u32 %s539_s24, 4  ;;  %s292_s25 = int_to_ptr.vmem [resolvable:$true] %s291_s25 }
  0x16   :  { %v376_v8 = vld [vmem:[#allocation7 + $0x8] sm:$0xff]  ;;  %v375_v9 = vld [vmem:[#allocation7] sm:$0xff]  ;;  %v390_v10 = vld [vmem:[#allocation8 + $0x38] sm:$0xff] }
  0x17   :  { %309 = vmatmul.msk.bf16.vlgmr.msra.gmra.mxu0 %vm102_vm0, %v89_v2  ;;  %272 = vmatpush.bf16.msra.mxu2 %v390_v10  ;;  %v389_v11 = vld [vmem:[#allocation8 + $0x30] sm:$0xff]  ;;  %v388_v12 = vld [vmem:[#allocation8 + $0x28] sm:$0xff]  ;;  %v387_v13 = vld [vmem:[#allocation8 + $0x20] sm:$0xff] }
  0x18   :  { %v386_v14 = vld [vmem:[#allocation8 + $0x18] sm:$0xff]  ;;  %v398_v15 = vld [vmem:[%s606_s2] ss:$0 sm:$0xff]  ;;  %v384_v22 = vld [vmem:[#allocation8 + $0x8] sm:$0xff] }
  0x19   :  { %190 = vmatpush.bf16.msra.mxu1 %v381_v3  ;;  %v385_v21 = vld [vmem:[#allocation8 + $0x10] sm:$0xff]  ;;  %v383_v23 = vld [vmem:[#allocation8] sm:$0xff] }
  0x1a   :  { %v399_v24 = vld [vmem:[%s608_s4] ss:$0 sm:$0xff] }
  0x1b   :  { %273 = vmatpush.bf16.msra.mxu2 %v389_v11  ;;  %v400_v30 = vld [vmem:[%s610_s6] ss:$0 sm:$0xff] }
  0x1d   :  { %191 = vmatpush.bf16.msra.mxu1 %v380_v4 }
  0x1f   :  { %274 = vmatpush.bf16.msra.mxu2 %v388_v12 }
  0x21   :  { %192 = vmatpush.bf16.msra.mxu1 %v379_v5 }
  0x23   :  { %275 = vmatpush.bf16.msra.mxu2 %v387_v13 }
  0x25   :  { %193 = vmatpush.bf16.msra.mxu1 %v378_v6 }
  0x27   :  { %276 = vmatpush.bf16.msra.mxu2 %v386_v14 }
  0x29   :  { %194 = vmatpush.bf16.msra.mxu1 %v377_v7 }
  0x2b   :  { %277 = vmatpush.bf16.msra.mxu2 %v385_v21 }
  0x2d   :  { %195 = vmatpush.bf16.msra.mxu1 %v376_v8 }
  0x2f   :  { %278 = vmatpush.bf16.msra.mxu2 %v384_v22 }
  0x31   :  { %196 = vmatpush.bf16.msra.mxu1 %v375_v9 }
  0x33   :  { %279 = vmatpush.bf16.msra.mxu2 %v383_v23 }
  0x94   :  { %v115_v16 = vpop.f32.mrf.mxu0 }
  0x95   :  { %v116_v17 = vadd.f32 %v398_v15, %v115_v16 }
  0x97   :  { %401 = vtanh.f32 %v116_v17 }
  0x9c   :  { %v117_v18 = vpop.f32.mrf.mxu0 }
  0x9d   :  { %v402_v19 = vpop.eup %401 }
  0x9e   :  { %v120_v20 = vpack.c.bf16 %v402_v19, %v402_v19 }
  0xa0   :  { %197 = vmatmul.bf16.vlgmr.msra.gmra.mxu1 %v120_v20 }
 0x11d   :  { %v198_v25 = vpop.f32.mrf.mxu1 }
 0x11e   :  { %v199_v26 = vadd.f32 %v399_v24, %v198_v25 }
 0x120   :  { %403 = vtanh.f32 %v199_v26 }
 0x125   :  { %v200_v27 = vpop.f32.mrf.mxu1 }
 0x126   :  { %v404_v28 = vpop.eup %403 }
 0x127   :  { %v203_v29 = vpack.c.bf16 %v404_v28, %v404_v28 }
 0x129   :  { %280 = vmatmul.bf16.vlgmr.msra.gmra.mxu2 %v203_v29 }
 0x1ac   :  { %v281_v31 = vpop.f32.mrf.mxu2 }
 0x1ad   :  { %v282_v32 = vadd.f32 %v400_v30, %v281_v31 }
 0x1af   :  { %285 = vst [vmem:[#allocation10] sm:$0xff] %v282_v32 }
 0x1b0   :  { %296 = dma.vmem_to_hbm [thread:$0]  %s292_s25, 128, %s294_s28, [#allocation4]  }
 0x1b4   :  { %v283_v33 = vpop.f32.mrf.mxu2 }
 0x1b5   :  { %531 = dma.done.wait [#allocation4], 128  }
 0x1b6   :  { %532 = vsyncadd [#allocation4], 4294967168 }
 0x1b7   :  { %301 = vsyncpa [#allocation3], 1 }
 0x1b8   :  { %302 = vsyncpa [#allocation6], 1 }
 0x1b9   :  { %303 = vsyncpa [#allocation9], 1 }
 0x1ba   :  { %304 = vsyncpa [#allocation4], 1 }

</bundles_post_ra>
